<compile_context>
chip_gen: v7x
topology: tpu7x:2x2x1
jax: 0.10.0
libtpu: 0.0.40
codegen_flags: <defaults>
</compile_context>

<pallas_src>
import jax
import jax.numpy as jnp
from jax.experimental import pallas as pl
from jax.experimental.pallas import tpu as pltpu

LANE = 128
DEFAULT_TILE_V = 2048  # vocab tile width for the streamed output projection


def _round_up(x, m):
    return (x + m - 1) // m * m


def _pad2(a, shape):
    out = jnp.zeros(shape, a.dtype)
    return out.at[: a.shape[0], : a.shape[1]].set(a)


# ----------------------------------------------------------------------------
# parameter preparation (done once, outside the decode loop)
# ----------------------------------------------------------------------------
def init_params(key, hidden_size, output_size):
    """PyTorch-layout f32 parameters."""
    H, V = hidden_size, output_size
    ks = jax.random.split(key, 7)
    s = 1.0 / jnp.sqrt(H)
    emb = jax.random.normal(ks[0], (V, H), jnp.float32) * 0.1
    w_ih = jax.random.uniform(ks[1], (3 * H, H), jnp.float32, -s, s)   # [r|z|n]
    w_hh = jax.random.uniform(ks[2], (3 * H, H), jnp.float32, -s, s)
    b_ih = jax.random.uniform(ks[3], (3 * H,), jnp.float32, -s, s)
    b_hh = jax.random.uniform(ks[4], (3 * H,), jnp.float32, -s, s)
    w_out = jax.random.uniform(ks[5], (V, H), jnp.float32, -s, s)
    b_out = jax.random.uniform(ks[6], (V,), jnp.float32, -s, s)
    return emb, w_ih, w_hh, b_ih, b_hh, w_out, b_out


def prepare_params(params, tile_v=DEFAULT_TILE_V):
    """Pad to lane-aligned shapes, fuse GRU gates into (Hp, 3*Hp) bf16 weights,
    transpose to x @ W form, poison padded vocab bias entries."""
    emb, w_ih, w_hh, b_ih, b_hh, w_out, b_out = params
    V, H = emb.shape
    assert V >= 1
    Hp = _round_up(H, LANE)
    Vp = _round_up(V, LANE)
    if Vp > tile_v:                 # multi-tile vocab: round up to tile multiple
        Vp = _round_up(V, tile_v)
    # else: single grid step covering the whole padded vocab (nV == 1).

    # embedding rows shaped (V, 1, Hp): the scalar-prefetch index_map fetches
    # exactly one (1, 1, Hp) row per call.
    emb_p = _pad2(emb, (V, Hp)).reshape(V, 1, Hp).astype(jnp.bfloat16)

    def fuse_gates_T(w):
        # torch (3H, H) [r|z|n] stacked on rows -> (Hp, 3*Hp) for y = x @ W,
        # each gate in its own lane-aligned Hp-wide column band.
        out = jnp.zeros((Hp, 3 * Hp), jnp.float32)
        for g in range(3):
            wg = w[g * H:(g + 1) * H, :].T                      # (H, H)
            out = out.at[:H, g * Hp:g * Hp + H].set(wg)
        return out.astype(jnp.bfloat16)

    def fuse_bias(b):               # (3H,) -> (1, 3*Hp) f32, lane-aligned bands
        out = jnp.zeros((1, 3 * Hp), jnp.float32)
        for g in range(3):
            out = out.at[0, g * Hp:g * Hp + H].set(b[g * H:(g + 1) * H])
        return out

    wi = fuse_gates_T(w_ih)
    wh = fuse_gates_T(w_hh)
    bi = fuse_bias(b_ih)
    bh = fuse_bias(b_hh)

    wout_p = _pad2(w_out.T, (Hp, Vp)).astype(jnp.bfloat16)      # (Hp, Vp)
    # Poison the padded vocab bias -> no per-tile iota/where mask in the kernel.
    bout_p = jnp.full((1, Vp), -1e30, jnp.float32).at[0, :V].set(b_out)

    return emb_p, wi, wh, bi, bh, wout_p, bout_p


def _vmem_limit_bytes(Hp, TILE_V, nV):
    """Right-sized VMEM budget: everything double-buffered + headroom."""
    bf16, f32 = 2, 4
    per_buf = (Hp * bf16                       # embedded row
               + Hp * f32                      # hidden
               + 2 * Hp * 3 * Hp * bf16        # fused W_ih, W_hh
               + 2 * 3 * Hp * f32              # fused biases
               + Hp * TILE_V * bf16            # W_out tile
               + TILE_V * f32                  # b_out tile
               + nV * TILE_V * f32             # resident logp block
               + Hp * f32)                     # new hidden
    scratch = Hp * bf16 + 2 * f32
    est = 2 * per_buf + scratch
    return int(min(2 * est + (4 << 20), 64 << 20))


# ----------------------------------------------------------------------------
# Pallas kernel + wrapper
# ----------------------------------------------------------------------------
def decoder_rnn_forward(tok, hidden, kparams, output_size, hidden_size):
    """tok: (1,) int32; hidden: (1, 1, H) f32. Returns (logp (1,V), hidden (1,1,H))."""
    emb_p, wi, wh, bi, bh, wout_p, bout_p = kparams
    V, H = output_size, hidden_size
    Hp = wi.shape[0]
    Vp = wout_p.shape[1]
    TILE_V = Vp if Vp <= DEFAULT_TILE_V else DEFAULT_TILE_V
    assert Vp % TILE_V == 0
    nV = Vp // TILE_V

    def kernel(tok_ref, emb_ref, h_ref, wi_ref, wh_ref, bi_ref, bh_ref,
               wout_ref, bout_ref, logp_ref, hnew_ref, hb_sc, m_sc, l_sc):
        v = pl.program_id(0)

        # ---- first vocab tile: single GRU step (2 fused gate matmuls) ----
        @pl.when(v == 0)
        def _():
            x = jnp.maximum(emb_ref[0], 0)                     # relu, bf16 (1,Hp)
            h = h_ref[...]                                     # (1, Hp) f32
            hb = h.astype(jnp.bfloat16)
            gi = jnp.dot(x, wi_ref[...],
                         preferred_element_type=jnp.float32) + bi_ref[...]
            gh = jnp.dot(hb, wh_ref[...],
                         preferred_element_type=jnp.float32) + bh_ref[...]
            # lane-aligned static slices of the fused (1, 3*Hp) gate rows
            r = jax.nn.sigmoid(gi[:, 0:Hp] + gh[:, 0:Hp])
            z = jax.nn.sigmoid(gi[:, Hp:2 * Hp] + gh[:, Hp:2 * Hp])
            n = jnp.tanh(gi[:, 2 * Hp:3 * Hp] + r * gh[:, 2 * Hp:3 * Hp])
            h_new = (1.0 - z) * n + z * h

            hnew_ref[...] = h_new                              # resident output
            hb_sc[...] = h_new.astype(jnp.bfloat16)            # feeds projection
            m_sc[...] = jnp.full((1, 1), -jnp.inf, jnp.float32)
            l_sc[...] = jnp.zeros((1, 1), jnp.float32)

        # ---- streamed output-projection tile + online log-softmax stats ----
        logits = jnp.dot(hb_sc[...], wout_ref[...],
                         preferred_element_type=jnp.float32) + bout_ref[...]
        m_prev = m_sc[...]
        m_new = jnp.maximum(m_prev, jnp.max(logits, axis=1, keepdims=True))
        l_sc[...] = (l_sc[...] * jnp.exp(m_prev - m_new)
                     + jnp.sum(jnp.exp(logits - m_new), axis=1, keepdims=True))
        m_sc[...] = m_new
        logp_ref[pl.ds(v, 1), :] = logits           # stash raw logits (resident)

        # ---- last tile: finalize log-softmax over the whole row ----
        @pl.when(v == pl.num_programs(0) - 1)
        def _():
            logp_ref[...] = logp_ref[...] - (m_sc[...] + jnp.log(l_sc[...]))

    hidden_p = jnp.zeros((1, Hp), jnp.float32).at[:, :H].set(hidden.reshape(1, H))
    tok = tok.astype(jnp.int32)

    grid_spec = pltpu.PrefetchScalarGridSpec(
        num_scalar_prefetch=1,
        grid=(nV,),
        in_specs=[
            pl.BlockSpec((1, 1, Hp), lambda v, t: (t[0], 0, 0)),   # one emb row
            pl.BlockSpec((1, Hp), lambda v, t: (0, 0)),            # hidden
            pl.BlockSpec((Hp, 3 * Hp), lambda v, t: (0, 0)),       # W_ih fused
            pl.BlockSpec((Hp, 3 * Hp), lambda v, t: (0, 0)),       # W_hh fused
            pl.BlockSpec((1, 3 * Hp), lambda v, t: (0, 0)),        # b_ih fused
            pl.BlockSpec((1, 3 * Hp), lambda v, t: (0, 0)),        # b_hh fused
            pl.BlockSpec((Hp, TILE_V), lambda v, t: (0, v)),       # W_out^T tile
            pl.BlockSpec((1, TILE_V), lambda v, t: (0, v)),        # b_out tile
        ],
        out_specs=[
            pl.BlockSpec((nV, TILE_V), lambda v, t: (0, 0)),       # logp (resident)
            pl.BlockSpec((1, Hp), lambda v, t: (0, 0)),            # new hidden
        ],
        scratch_shapes=[
            pltpu.VMEM((1, Hp), jnp.bfloat16),   # h_new (bf16) for projection
            pltpu.VMEM((1, 1), jnp.float32),     # running max
            pltpu.VMEM((1, 1), jnp.float32),     # running exp-sum
        ],
    )

    logp_pad, hnew_pad = pl.pallas_call(
        kernel,
        out_shape=(jax.ShapeDtypeStruct((nV, TILE_V), jnp.float32),
                   jax.ShapeDtypeStruct((1, Hp), jnp.float32)),
        grid_spec=grid_spec,
        compiler_params=pltpu.CompilerParams(
            dimension_semantics=("arbitrary",),   # sequential: online softmax
            vmem_limit_bytes=_vmem_limit_bytes(Hp, TILE_V, nV),
        ),
    )(tok, emb_p, hidden_p, wi, wh, bi, bh, wout_p, bout_p)

    logp = logp_pad.reshape(1, Vp)[:, :V]
    new_hidden = hnew_pad[:, :H].reshape(1, 1, H)
    return logp, new_hidden


# ----------------------------------------------------------------------------
# pure-JAX reference (same bf16 weight storage as the kernel)
# ----------------------------------------------------------------------------
def reference_forward(tok, hidden, params):
    emb, w_ih, w_hh, b_ih, b_hh, w_out, b_out = params
    H = hidden.shape[-1]
    bf16 = jnp.bfloat16
    x = jnp.maximum(emb[tok[0]].astype(bf16).astype(jnp.float32), 0.0).reshape(1, H)
    h = hidden.reshape(1, H)
    gi = jnp.dot(x.astype(bf16), w_ih.T.astype(bf16),
                 preferred_element_type=jnp.float32) + b_ih[None, :]
    gh = jnp.dot(h.astype(bf16), w_hh.T.astype(bf16),
                 preferred_element_type=jnp.float32) + b_hh[None, :]
    r = jax.nn.sigmoid(gi[:, :H] + gh[:, :H])
    z = jax.nn.sigmoid(gi[:, H:2 * H] + gh[:, H:2 * H])
    n = jnp.tanh(gi[:, 2 * H:] + r * gh[:, 2 * H:])
    h_new = (1.0 - z) * n + z * h
    logits = jnp.dot(h_new.astype(bf16), w_out.T.astype(bf16),
                     preferred_element_type=jnp.float32) + b_out[None, :]
    return jax.nn.log_softmax(logits, axis=1), h_new.reshape(1, 1, H)


if __name__ == "__main__":
    hidden_size = 32
    output_size = 64

    key = jax.random.PRNGKey(0)
    params = init_params(key, hidden_size, output_size)
    kparams = prepare_params(params)

    tok = jnp.array([3], dtype=jnp.int32)                  # single token index
    hidden = jnp.zeros((1, 1, hidden_size), jnp.float32)   # DecoderRNN.initHidden()

    fwd = jax.jit(decoder_rnn_forward, static_argnums=(3, 4))
    logp, new_hidden = fwd(tok, hidden, kparams, output_size, hidden_size)
    jax.block_until_ready((logp, new_hidden))

    # shape / normalization sanity
    assert logp.shape == (1, output_size)
    assert new_hidden.shape == (1, 1, hidden_size)
    assert jnp.allclose(jnp.sum(jnp.exp(logp)), 1.0, atol=1e-4)

    # numerical check against a pure-JAX reference
    logp_ref, hidden_ref = reference_forward(tok, hidden, params)
    assert jnp.allclose(logp, logp_ref, atol=5e-3, rtol=0.0)
    assert jnp.allclose(new_hidden, hidden_ref, atol=5e-3, rtol=0.0)

    print("KERNEL_OK")
</pallas_src>

<mosaic_0001>
module attributes {stable_mosaic.version = 11 : i64} {
  func.func @kernel(%arg0: i32, %arg1: memref<1xi32, #tpu.memory_space<smem>>, %arg2: memref<1x1x128xbf16, #tpu.memory_space<vmem>>, %arg3: memref<1x128xf32, #tpu.memory_space<vmem>>, %arg4: memref<128x384xbf16, #tpu.memory_space<vmem>>, %arg5: memref<128x384xbf16, #tpu.memory_space<vmem>>, %arg6: memref<1x384xf32, #tpu.memory_space<vmem>>, %arg7: memref<1x384xf32, #tpu.memory_space<vmem>>, %arg8: memref<128x128xbf16, #tpu.memory_space<vmem>>, %arg9: memref<1x128xf32, #tpu.memory_space<vmem>>, %arg10: memref<1x128xf32, #tpu.memory_space<vmem>>, %arg11: memref<1x128xf32, #tpu.memory_space<vmem>>, %arg12: memref<1x128xbf16, #tpu.memory_space<vmem>>, %arg13: memref<1x1xf32, #tpu.memory_space<vmem>>, %arg14: memref<1x1xf32, #tpu.memory_space<vmem>>) attributes {dimension_semantics = [#tpu.dimension_semantics<arbitrary>], iteration_bounds = array<i64: 1>, scalar_prefetch = 1 : i64, scratch_operands = 3 : i64, tpu.core_type = #tpu.core_type<tc>, window_params = [{transform_indices = @transform_0, window_bounds = array<i64: 1, 1, 128>}, {pipeline_mode = #tpu.pipeline_mode<synchronous>, transform_indices = @transform_1, window_bounds = array<i64: 1, 128>}, {pipeline_mode = #tpu.pipeline_mode<synchronous>, transform_indices = @transform_2, window_bounds = array<i64: 128, 384>}, {pipeline_mode = #tpu.pipeline_mode<synchronous>, transform_indices = @transform_3, window_bounds = array<i64: 128, 384>}, {pipeline_mode = #tpu.pipeline_mode<synchronous>, transform_indices = @transform_4, window_bounds = array<i64: 1, 384>}, {pipeline_mode = #tpu.pipeline_mode<synchronous>, transform_indices = @transform_5, window_bounds = array<i64: 1, 384>}, {transform_indices = @transform_6, window_bounds = array<i64: 128, 128>}, {transform_indices = @transform_7, window_bounds = array<i64: 1, 128>}, {pipeline_mode = #tpu.pipeline_mode<synchronous>, transform_indices = @transform_8, window_bounds = array<i64: 1, 128>}, {pipeline_mode = #tpu.pipeline_mode<synchronous>, transform_indices = @transform_9, window_bounds = array<i64: 1, 128>}]} {
    %c0_i32 = arith.constant 0 : i32
    %0 = arith.cmpi eq, %arg0, %c0_i32 : i32
    %1 = arith.extui %0 : i1 to i32
    %c0_i32_0 = arith.constant 0 : i32
    %2 = arith.cmpi ne, %1, %c0_i32_0 : i32
    scf.if %2 {
      %c0_19 = arith.constant 0 : index
      %c0_20 = arith.constant 0 : index
      %c0_21 = arith.constant 0 : index
      %29 = vector.load %arg2[%c0_19, %c0_20, %c0_21] : memref<1x1x128xbf16, #tpu.memory_space<vmem>>, vector<1x1x128xbf16>
      %30 = vector.shape_cast %29 : vector<1x1x128xbf16> to vector<1x128xbf16>
      %cst_22 = arith.constant 0.000000e+00 : bf16
      %31 = vector.broadcast %cst_22 : bf16 to vector<1x128xbf16>
      %32 = arith.maximumf %30, %31 : vector<1x128xbf16>
      %c0_23 = arith.constant 0 : index
      %c0_24 = arith.constant 0 : index
      %33 = vector.load %arg3[%c0_23, %c0_24] : memref<1x128xf32, #tpu.memory_space<vmem>>, vector<1x128xf32>
      %34 = arith.truncf %33 : vector<1x128xf32> to vector<1x128xbf16>
      %c0_25 = arith.constant 0 : index
      %c0_26 = arith.constant 0 : index
      %35 = vector.load %arg4[%c0_25, %c0_26] : memref<128x384xbf16, #tpu.memory_space<vmem>>, vector<128x384xbf16>
      %cst_27 = arith.constant dense<0.000000e+00> : vector<1x384xf32>
      %36 = tpu.matmul %32, %35, %cst_27 {dimension_numbers = #tpu.dot_dimension_numbers<[1], [0], [0], [1], [0, 0, 1, 1], [], []>} : vector<1x128xbf16>, vector<128x384xbf16>, vector<1x384xf32> -> vector<1x384xf32>
      %c0_28 = arith.constant 0 : index
      %c0_29 = arith.constant 0 : index
      %37 = vector.load %arg6[%c0_28, %c0_29] : memref<1x384xf32, #tpu.memory_space<vmem>>, vector<1x384xf32>
      %38 = arith.addf %36, %37 : vector<1x384xf32>
      %c0_30 = arith.constant 0 : index
      %c0_31 = arith.constant 0 : index
      %39 = vector.load %arg5[%c0_30, %c0_31] : memref<128x384xbf16, #tpu.memory_space<vmem>>, vector<128x384xbf16>
      %cst_32 = arith.constant dense<0.000000e+00> : vector<1x384xf32>
      %40 = tpu.matmul %34, %39, %cst_32 {dimension_numbers = #tpu.dot_dimension_numbers<[1], [0], [0], [1], [0, 0, 1, 1], [], []>} : vector<1x128xbf16>, vector<128x384xbf16>, vector<1x384xf32> -> vector<1x384xf32>
      %c0_33 = arith.constant 0 : index
      %c0_34 = arith.constant 0 : index
      %41 = vector.load %arg7[%c0_33, %c0_34] : memref<1x384xf32, #tpu.memory_space<vmem>>, vector<1x384xf32>
      %42 = arith.addf %40, %41 : vector<1x384xf32>
      %43 = vector.extract_strided_slice %38 {offsets = [0, 0], sizes = [1, 128], strides = [1, 1]} : vector<1x384xf32> to vector<1x128xf32>
      %44 = vector.extract_strided_slice %42 {offsets = [0, 0], sizes = [1, 128], strides = [1, 1]} : vector<1x384xf32> to vector<1x128xf32>
      %45 = arith.addf %43, %44 : vector<1x128xf32>
      %46 = arith.negf %45 : vector<1x128xf32>
      %47 = math.exp %46 : vector<1x128xf32>
      %cst_35 = arith.constant 1.000000e+00 : f32
      %48 = vector.broadcast %cst_35 : f32 to vector<1x128xf32>
      %49 = arith.addf %48, %47 : vector<1x128xf32>
      %50 = arith.divf %48, %49 : vector<1x128xf32>
      %51 = vector.extract_strided_slice %38 {offsets = [0, 128], sizes = [1, 128], strides = [1, 1]} : vector<1x384xf32> to vector<1x128xf32>
      %52 = vector.extract_strided_slice %42 {offsets = [0, 128], sizes = [1, 128], strides = [1, 1]} : vector<1x384xf32> to vector<1x128xf32>
      %53 = arith.addf %51, %52 : vector<1x128xf32>
      %54 = arith.negf %53 : vector<1x128xf32>
      %55 = math.exp %54 : vector<1x128xf32>
      %cst_36 = arith.constant 1.000000e+00 : f32
      %56 = vector.broadcast %cst_36 : f32 to vector<1x128xf32>
      %57 = arith.addf %56, %55 : vector<1x128xf32>
      %58 = arith.divf %56, %57 : vector<1x128xf32>
      %59 = vector.extract_strided_slice %38 {offsets = [0, 256], sizes = [1, 128], strides = [1, 1]} : vector<1x384xf32> to vector<1x128xf32>
      %60 = vector.extract_strided_slice %42 {offsets = [0, 256], sizes = [1, 128], strides = [1, 1]} : vector<1x384xf32> to vector<1x128xf32>
      %61 = arith.mulf %50, %60 : vector<1x128xf32>
      %62 = arith.addf %59, %61 : vector<1x128xf32>
      %63 = math.tanh %62 : vector<1x128xf32>
      %cst_37 = arith.constant 1.000000e+00 : f32
      %64 = vector.broadcast %cst_37 : f32 to vector<1x128xf32>
      %65 = arith.subf %64, %58 : vector<1x128xf32>
      %66 = arith.mulf %65, %63 : vector<1x128xf32>
      %67 = arith.mulf %58, %33 : vector<1x128xf32>
      %68 = arith.addf %66, %67 : vector<1x128xf32>
      %c0_38 = arith.constant 0 : index
      %c0_39 = arith.constant 0 : index
      %69 = vector.load %arg11[%c0_38, %c0_39] : memref<1x128xf32, #tpu.memory_space<vmem>>, vector<1x128xf32>
      tpu.vector_store %arg11[%c0_38, %c0_39], %68 {strides = array<i32>} : memref<1x128xf32, #tpu.memory_space<vmem>>, vector<1x128xf32>,
      %70 = arith.truncf %68 : vector<1x128xf32> to vector<1x128xbf16>
      %c0_40 = arith.constant 0 : index
      %c0_41 = arith.constant 0 : index
      %71 = vector.load %arg12[%c0_40, %c0_41] : memref<1x128xbf16, #tpu.memory_space<vmem>>, vector<1x128xbf16>
      tpu.vector_store %arg12[%c0_40, %c0_41], %70 {strides = array<i32>} : memref<1x128xbf16, #tpu.memory_space<vmem>>, vector<1x128xbf16>,
      %cst_42 = arith.constant 0xFF800000 : f32
      %72 = vector.broadcast %cst_42 : f32 to vector<1x1xf32>
      %c0_43 = arith.constant 0 : index
      %c0_44 = arith.constant 0 : index
      %73 = vector.load %arg13[%c0_43, %c0_44] : memref<1x1xf32, #tpu.memory_space<vmem>>, vector<1x1xf32>
      tpu.vector_store %arg13[%c0_43, %c0_44], %72 {strides = array<i32>} : memref<1x1xf32, #tpu.memory_space<vmem>>, vector<1x1xf32>,
      %cst_45 = arith.constant 0.000000e+00 : f32
      %74 = vector.broadcast %cst_45 : f32 to vector<1x1xf32>
      %c0_46 = arith.constant 0 : index
      %c0_47 = arith.constant 0 : index
      %75 = vector.load %arg14[%c0_46, %c0_47] : memref<1x1xf32, #tpu.memory_space<vmem>>, vector<1x1xf32>
      tpu.vector_store %arg14[%c0_46, %c0_47], %74 {strides = array<i32>} : memref<1x1xf32, #tpu.memory_space<vmem>>, vector<1x1xf32>,
    } else {
    }
    %c0 = arith.constant 0 : index
    %c0_1 = arith.constant 0 : index
    %3 = vector.load %arg12[%c0, %c0_1] : memref<1x128xbf16, #tpu.memory_space<vmem>>, vector<1x128xbf16>
    %c0_2 = arith.constant 0 : index
    %c0_3 = arith.constant 0 : index
    %4 = vector.load %arg8[%c0_2, %c0_3] : memref<128x128xbf16, #tpu.memory_space<vmem>>, vector<128x128xbf16>
    %cst = arith.constant dense<0.000000e+00> : vector<1x128xf32>
    %5 = tpu.matmul %3, %4, %cst {dimension_numbers = #tpu.dot_dimension_numbers<[1], [0], [0], [1], [0, 0, 1, 1], [], []>} : vector<1x128xbf16>, vector<128x128xbf16>, vector<1x128xf32> -> vector<1x128xf32>
    %c0_4 = arith.constant 0 : index
    %c0_5 = arith.constant 0 : index
    %6 = vector.load %arg9[%c0_4, %c0_5] : memref<1x128xf32, #tpu.memory_space<vmem>>, vector<1x128xf32>
    %7 = arith.addf %5, %6 : vector<1x128xf32>
    %c0_6 = arith.constant 0 : index
    %c0_7 = arith.constant 0 : index
    %8 = vector.load %arg13[%c0_6, %c0_7] : memref<1x1xf32, #tpu.memory_space<vmem>>, vector<1x1xf32>
    %cst_8 = arith.constant dense<0xFF800000> : vector<1xf32>
    %9 = vector.multi_reduction <maximumf>, %7, %cst_8 [1] : vector<1x128xf32> to vector<1xf32>
    %10 = vector.shape_cast %9 : vector<1xf32> to vector<1x1xf32>
    %11 = arith.maximumf %8, %10 : vector<1x1xf32>
    %c0_9 = arith.constant 0 : index
    %c0_10 = arith.constant 0 : index
    %12 = vector.load %arg14[%c0_9, %c0_10] : memref<1x1xf32, #tpu.memory_space<vmem>>, vector<1x1xf32>
    %13 = arith.subf %8, %11 : vector<1x1xf32>
    %14 = math.exp %13 : vector<1x1xf32>
    %15 = arith.mulf %12, %14 : vector<1x1xf32>
    %16 = vector.broadcast %11 : vector<1x1xf32> to vector<1x128xf32>
    %17 = arith.subf %7, %16 : vector<1x128xf32>
    %18 = math.exp %17 : vector<1x128xf32>
    %cst_11 = arith.constant dense<0.000000e+00> : vector<1xf32>
    %19 = vector.multi_reduction <add>, %18, %cst_11 [1] : vector<1x128xf32> to vector<1xf32>
    %20 = vector.shape_cast %19 : vector<1xf32> to vector<1x1xf32>
    %21 = arith.addf %15, %20 : vector<1x1xf32>
    %c0_12 = arith.constant 0 : index
    %c0_13 = arith.constant 0 : index
    %22 = vector.load %arg14[%c0_12, %c0_13] : memref<1x1xf32, #tpu.memory_space<vmem>>, vector<1x1xf32>
    tpu.vector_store %arg14[%c0_12, %c0_13], %21 {strides = array<i32>} : memref<1x1xf32, #tpu.memory_space<vmem>>, vector<1x1xf32>,
    %c0_14 = arith.constant 0 : index
    %c0_15 = arith.constant 0 : index
    %23 = vector.load %arg13[%c0_14, %c0_15] : memref<1x1xf32, #tpu.memory_space<vmem>>, vector<1x1xf32>
    tpu.vector_store %arg13[%c0_14, %c0_15], %11 {strides = array<i32>} : memref<1x1xf32, #tpu.memory_space<vmem>>, vector<1x1xf32>,
    %24 = arith.index_cast %arg0 : i32 to index
    %c0_16 = arith.constant 0 : index
    %25 = vector.load %arg10[%24, %c0_16] : memref<1x128xf32, #tpu.memory_space<vmem>>, vector<1x128xf32>
    tpu.vector_store %arg10[%24, %c0_16], %7 {strides = array<i32>} : memref<1x128xf32, #tpu.memory_space<vmem>>, vector<1x128xf32>,
    %c0_i32_17 = arith.constant 0 : i32
    %26 = arith.cmpi eq, %arg0, %c0_i32_17 : i32
    %27 = arith.extui %26 : i1 to i32
    %c0_i32_18 = arith.constant 0 : i32
    %28 = arith.cmpi ne, %27, %c0_i32_18 : i32
    scf.if %28 {
      %c0_19 = arith.constant 0 : index
      %c0_20 = arith.constant 0 : index
      %29 = vector.load %arg10[%c0_19, %c0_20] : memref<1x128xf32, #tpu.memory_space<vmem>>, vector<1x128xf32>
      %c0_21 = arith.constant 0 : index
      %c0_22 = arith.constant 0 : index
      %30 = vector.load %arg13[%c0_21, %c0_22] : memref<1x1xf32, #tpu.memory_space<vmem>>, vector<1x1xf32>
      %c0_23 = arith.constant 0 : index
      %c0_24 = arith.constant 0 : index
      %31 = vector.load %arg14[%c0_23, %c0_24] : memref<1x1xf32, #tpu.memory_space<vmem>>, vector<1x1xf32>
      %32 = math.log %31 : vector<1x1xf32>
      %33 = arith.addf %30, %32 : vector<1x1xf32>
      %34 = vector.broadcast %33 : vector<1x1xf32> to vector<1x128xf32>
      %35 = arith.subf %29, %34 : vector<1x128xf32>
      %c0_25 = arith.constant 0 : index
      %c0_26 = arith.constant 0 : index
      %36 = vector.load %arg10[%c0_25, %c0_26] : memref<1x128xf32, #tpu.memory_space<vmem>>, vector<1x128xf32>
      tpu.vector_store %arg10[%c0_25, %c0_26], %35 {strides = array<i32>} : memref<1x128xf32, #tpu.memory_space<vmem>>, vector<1x128xf32>,
    } else {
    }
    return
  }
  func.func @transform_0(%arg0: i32, %arg1: memref<1xi32, #tpu.memory_space<smem>>) -> (i32, i32, i32) {
    %c0 = arith.constant 0 : index
    %0 = memref.load %arg1[%c0] : memref<1xi32, #tpu.memory_space<smem>>
    %c0_i32 = arith.constant 0 : i32
    %c0_i32_0 = arith.constant 0 : i32
    %c0_i32_1 = arith.constant 0 : i32
    return %0, %c0_i32, %c0_i32_0 : i32, i32, i32
  }
  func.func @transform_1(%arg0: i32, %arg1: memref<1xi32, #tpu.memory_space<smem>>) -> (i32, i32) {
    %c0_i32 = arith.constant 0 : i32
    %c0_i32_0 = arith.constant 0 : i32
    %c0_i32_1 = arith.constant 0 : i32
    return %c0_i32, %c0_i32_0 : i32, i32
  }
  func.func @transform_2(%arg0: i32, %arg1: memref<1xi32, #tpu.memory_space<smem>>) -> (i32, i32) {
    %c0_i32 = arith.constant 0 : i32
    %c0_i32_0 = arith.constant 0 : i32
    %c0_i32_1 = arith.constant 0 : i32
    return %c0_i32, %c0_i32_0 : i32, i32
  }
  func.func @transform_3(%arg0: i32, %arg1: memref<1xi32, #tpu.memory_space<smem>>) -> (i32, i32) {
    %c0_i32 = arith.constant 0 : i32
    %c0_i32_0 = arith.constant 0 : i32
    %c0_i32_1 = arith.constant 0 : i32
    return %c0_i32, %c0_i32_0 : i32, i32
  }
  func.func @transform_4(%arg0: i32, %arg1: memref<1xi32, #tpu.memory_space<smem>>) -> (i32, i32) {
    %c0_i32 = arith.constant 0 : i32
    %c0_i32_0 = arith.constant 0 : i32
    %c0_i32_1 = arith.constant 0 : i32
    return %c0_i32, %c0_i32_0 : i32, i32
  }
  func.func @transform_5(%arg0: i32, %arg1: memref<1xi32, #tpu.memory_space<smem>>) -> (i32, i32) {
    %c0_i32 = arith.constant 0 : i32
    %c0_i32_0 = arith.constant 0 : i32
    %c0_i32_1 = arith.constant 0 : i32
    return %c0_i32, %c0_i32_0 : i32, i32
  }
  func.func @transform_6(%arg0: i32, %arg1: memref<1xi32, #tpu.memory_space<smem>>) -> (i32, i32) {
    %c0_i32 = arith.constant 0 : i32
    %c0_i32_0 = arith.constant 0 : i32
    return %c0_i32, %arg0 : i32, i32
  }
  func.func @transform_7(%arg0: i32, %arg1: memref<1xi32, #tpu.memory_space<smem>>) -> (i32, i32) {
    %c0_i32 = arith.constant 0 : i32
    %c0_i32_0 = arith.constant 0 : i32
    return %c0_i32, %arg0 : i32, i32
  }
  func.func @transform_8(%arg0: i32, %arg1: memref<1xi32, #tpu.memory_space<smem>>) -> (i32, i32) {
    %c0_i32 = arith.constant 0 : i32
    %c0_i32_0 = arith.constant 0 : i32
    %c0_i32_1 = arith.constant 0 : i32
    return %c0_i32, %c0_i32_0 : i32, i32
  }
  func.func @transform_9(%arg0: i32, %arg1: memref<1xi32, #tpu.memory_space<smem>>) -> (i32, i32) {
    %c0_i32 = arith.constant 0 : i32
    %c0_i32_0 = arith.constant 0 : i32
    %c0_i32_1 = arith.constant 0 : i32
    return %c0_i32, %c0_i32_0 : i32, i32
  }
}

</mosaic_0001>

<bundles_post_ra>
// kernel: decoder_rnn_forward.1
= control target key start
LH: loop header
LB: loop body
LE: loop exit
PB: predicated region body
PF: predicated region fallthrough
CT: control target
= control target key end

     0   :  { %17 = vsyncpa [#allocation8], 0  ;;  %s1339_s0 = inlined_call_operand.<no memory space> [shape: s32[1], index: 0, kind: input, shape index: {}]   ;;  %s1340_s1 = inlined_call_operand.vmem [shape: bf16[64,1,128], index: 1, kind: input, shape index: {}]   ;;  %s1341_s2 = inlined_call_operand.vmem [shape: f32[1,128], index: 2, kind: input, shape index: {}]   ;;  %s1342_s3 = inlined_call_operand.hbm [shape: bf16[128,384], index: 3, kind: input, shape index: {}]   ;;  %s1343_s4 = inlined_call_operand.hbm [shape: bf16[128,384], index: 4, kind: input, shape index: {}]   ;;  %s1344_s5 = inlined_call_operand.vmem [shape: f32[1,384], index: 5, kind: input, shape index: {}]   ;;  %s1345_s6 = inlined_call_operand.vmem [shape: f32[1,384], index: 6, kind: input, shape index: {}]   ;;  %s1346_s7 = inlined_call_operand.vmem [shape: bf16[128,128], index: 7, kind: input, shape index: {}]   ;;  %s1347_s8 = inlined_call_operand.vmem [shape: f32[1,128], index: 8, kind: input, shape index: {}]   ;;  %s1348_s9 = inlined_call_operand.hbm [shape: f32[1,128], index: 9, kind: output, shape index: {0}]   ;;  %s1349_s10 = inlined_call_operand.vmem [shape: f32[1,128], index: 10, kind: output, shape index: {1}]  }
   0x1   :  { %18 = vsyncpa [#allocation11], 0 }
   0x2   :  { %19 = vsyncpa [#allocation9], 0  ;;  %s1137_s13 = smov [#allocation7]   ;;  %s1065_s17 = scalar_lea.hbm %s1342_s3, 3072 }
   0x3   :  { %s34_s14 = sshll.u32 %s1137_s13, 4  ;;  %p1066_p0 = scmp.ne.s32.totalorder %s1342_s3, %s1065_s17  ;;  %s35_s14 = int_to_ptr.vmem [resolvable:$true] %s34_s14 }
   0x4   :  { %p1069_p1 = scmp.lt.u32.totalorder %s1065_s17, %s1342_s3 }
   0x6   :  { %p1071_p2 = pnand %p1069_p1, %p1066_p0 }
   0x8   :  { %1074 = shalt.err (!%p1071_p2)
}
   0x9   :  { %s1075_s22 = scalar_lea.vmem %s35_s14, 3072  ;;  %p1080_p4 = scmp.lt.s32.totalorder %s35_s14, %s35_s14 }
   0xa   :  { %p1076_p3 = scmp.ne.s32.totalorder %s35_s14, %s1075_s22  ;;  %p1081_p5 = scmp.lt.s32.totalorder %s1075_s22, %s1075_s22 }
   0xc   :  { %p1082_p6 = por %p1081_p5, %p1080_p4 }
   0xe   :  { %p1083_p7 = pnand %p1082_p6, %p1076_p3 }
  0x10   :  { %1086 = shalt.err (!%p1083_p7)
}
  0x11   :  { %s1138_s23 = smov 192   ;;  %s1139_s24 = smov 12  }
  0x12   :  { %40 = dma.hbm_to_vmem [thread:$0]  %s1342_s3, 3072, %s35_s14, [#allocation8], %s1138_s23, %s1138_s23, %s1139_s24  }
  0x13   :  { %s1140_s27 = smov [#allocation10]   ;;  %s1087_s11 = scalar_lea.hbm %s1343_s4, 3072 }
  0x14   :  { %s46_s28 = sshll.u32 %s1140_s27, 4  ;;  %p1088_p8 = scmp.ne.s32.totalorder %s1343_s4, %s1087_s11  ;;  %s47_s28 = int_to_ptr.vmem [resolvable:$true] %s46_s28 }
  0x15   :  { %p1091_p9 = scmp.lt.u32.totalorder %s1087_s11, %s1343_s4 }
  0x17   :  { %p1093_p10 = pnand %p1091_p9, %p1088_p8 }
  0x19   :  { %1096 = shalt.err (!%p1093_p10)
}
  0x1a   :  { %s1097_s17 = scalar_lea.vmem %s47_s28, 3072  ;;  %p1102_p12 = scmp.lt.s32.totalorder %s47_s28, %s47_s28 }
  0x1b   :  { %p1098_p11 = scmp.ne.s32.totalorder %s47_s28, %s1097_s17  ;;  %p1103_p13 = scmp.lt.s32.totalorder %s1097_s17, %s1097_s17 }
  0x1d   :  { %p1104_p0 = por %p1103_p13, %p1102_p12 }
  0x1f   :  { %p1105_p1 = pnand %p1104_p0, %p1098_p11 }
  0x21   :  { %1108 = shalt.err (!%p1105_p1)
}
  0x22   :  { %52 = dma.hbm_to_vmem [thread:$0]  %s1343_s4, 3072, %s47_s28, [#allocation11], %s1138_s23, %s1138_s23, %s1139_s24  }
  0x23   :  { %1131 = dma.done.wait [#allocation8], 3072  }
  0x24   :  { %1132 = vsyncadd [#allocation8], 4294964224 }
  0x25   :  { %1133 = dma.done.wait [#allocation11], 3072  }
  0x26   :  { %1134 = vsyncadd [#allocation11], 4294964224  ;;  %v1141_v0 = vmov 0.0   ;;  %v1142_v1 = vmov 0   ;;  %vm1143_vm0 = vmmov 0   ;;  %p72_p2 = scmp.lt.s32.totalorder %s1339_s0, 63 }
  0x27   :  { %898 = vmatprep.subr.bf16.mxu1 %v1141_v0  ;;  %294 = vmatprep.mubr.bf16.mxu0 %v1142_v1  ;;  %v977_v2 = vld [vmem:[#allocation7 + $0x4] ss:$12 sps:$4 sm:$0xff]   ;;  %v979_v3 = vld [vmem:[#allocation7] ss:$12 sps:$4 sm:$0xff]   ;;  %v980_v4 = vld [vmem:[#allocation7 + $0x1c] ss:$12 sps:$4 sm:$0xff]  }
  0x28   :  { %914 = vmatprep.mubr.msk.bf16.mxu1 %vm1143_vm0, %v1141_v0  ;;  %975 = vset.pattern.permute.xlu0 %v1142_v1  ;;  %v982_v5 = vld [vmem:[#allocation7 + $0x18] ss:$12 sps:$4 sm:$0xff]   ;;  %v983_v6 = vld [vmem:[#allocation7 + $0x34] ss:$12 sps:$4 sm:$0xff]   ;;  %v985_v7 = vld [vmem:[#allocation7 + $0x30] ss:$12 sps:$4 sm:$0xff]  }
  0x29   :  { %976 = vset.pattern.permute.xlu1 %v1142_v1  ;;  %262 = vmatprep.subr.bf16.mxu0 %v977_v2  ;;  %v986_v8 = vld [vmem:[#allocation7 + $0x4c] ss:$12 sps:$4 sm:$0xff]   ;;  %v997_v9 = vld [vmem:[#allocation7 + $0x8] ss:$12 sps:$4 sm:$0xff]   ;;  %v989_v11 = vld [vmem:[#allocation7 + $0x64] ss:$12 sps:$4 sm:$0xff]  }
  0x2a   :  { %263 = vmatpush1.bf16.msra.mxu0 %v979_v3  ;;  %v988_v10 = vld [vmem:[#allocation7 + $0x48] ss:$12 sps:$4 sm:$0xff]   ;;  %899 = vmatpush3.bf16.msra.mxu1 %v997_v9  ;;  %v1001_v12 = vld [vmem:[#allocation7 + $0x20] ss:$12 sps:$4 sm:$0xff]   ;;  %v1003_v14 = vld [vmem:[#allocation7 + $0x38] ss:$12 sps:$4 sm:$0xff]   ;;  %v247_v3 = vlaneseq }
  0x2b   :  { %264 = vmatprep.subr.bf16.mxu0 %v980_v4  ;;  %900 = vmatprep.subr.bf16.mxu1 %v1141_v0  ;;  %v991_v13 = vld [vmem:[#allocation7 + $0x60] ss:$12 sps:$4 sm:$0xff]   ;;  %v992_v15 = vld [vmem:[#allocation7 + $0x7c] ss:$12 sps:$4 sm:$0xff]   ;;  %v994_v16 = vld [vmem:[#allocation7 + $0x78] ss:$12 sps:$4 sm:$0xff]  }
  0x2c   :  { %s1351_s0 = smov (!%p72_p2, %s1339_s0), 63  ;;  %v1007_v17 = vld [vmem:[#allocation7 + $0x50] ss:$12 sps:$4 sm:$0xff]   ;;  %v995_v18 = vld [vmem:[#allocation7 + $0x94] ss:$12 sps:$4 sm:$0xff]   ;;  %v1042_v55 = vld [vmem:[%s1346_s7 + $0x8] sm:$0xff]  }
  0x2d   :  { %v998_v19 = vld [vmem:[#allocation7 + $0x90] ss:$12 sps:$4 sm:$0xff]   ;;  %s74_s23 = scalar_lea.vmem %s1340_s1, %s1351_s0  ;;  %v1011_v20 = vld [vmem:[#allocation7 + $0x68] ss:$12 sps:$4 sm:$0xff]   ;;  %v999_v21 = vld [vmem:[#allocation7 + $0xac] ss:$12 sps:$4 sm:$0xff]  }
  0x2e   :  { %265 = vmatpush1.bf16.msra.mxu0 %v982_v5  ;;  %901 = vmatpush3.bf16.msra.mxu1 %v1001_v12  ;;  %v1002_v22 = vld [vmem:[#allocation7 + $0xa8] ss:$12 sps:$4 sm:$0xff]   ;;  %v81_v23 = vld [vmem:[%s74_s23] sm:$0x1]  ;;  %v1015_v24 = vld [vmem:[#allocation7 + $0x80] ss:$12 sps:$4 sm:$0xff]  }
  0x2f   :  { %266 = vmatprep.subr.bf16.mxu0 %v983_v6  ;;  %902 = vmatprep.subr.bf16.mxu1 %v1141_v0  ;;  %v1006_v25 = vld [vmem:[#allocation10 + $0x4] ss:$12 sps:$4 sm:$0xff]   ;;  %v82_v26 = vmax.bf16 %v1142_v1, %v81_v23  ;;  %v1004_v27 = vld [vmem:[#allocation10] ss:$12 sps:$4 sm:$0xff]   ;;  %v1010_v29 = vld [vmem:[#allocation10 + $0x1c] ss:$12 sps:$4 sm:$0xff]  }
  0x30   :  { %v1019_v28 = vld [vmem:[#allocation7 + $0x98] ss:$12 sps:$4 sm:$0xff]   ;;  %v1023_v31 = vld [vmem:[#allocation7 + $0xb0] ss:$12 sps:$4 sm:$0xff]   ;;  %v1014_v32 = vld [vmem:[#allocation10 + $0x34] ss:$12 sps:$4 sm:$0xff]  }
  0x31   :  { %v1008_v30 = vld [vmem:[#allocation10 + $0x18] ss:$12 sps:$4 sm:$0xff]   ;;  %v1012_v33 = vld [vmem:[#allocation10 + $0x30] ss:$12 sps:$4 sm:$0xff]   ;;  %v1030_v35 = vld [vmem:[#allocation10 + $0x8] ss:$12 sps:$4 sm:$0xff]  }
  0x32   :  { %267 = vmatpush1.bf16.msra.mxu0 %v985_v7  ;;  %903 = vmatpush3.bf16.msra.mxu1 %v1003_v14  ;;  %v1018_v34 = vld [vmem:[#allocation10 + $0x4c] ss:$12 sps:$4 sm:$0xff]   ;;  %v1016_v36 = vld [vmem:[#allocation10 + $0x48] ss:$12 sps:$4 sm:$0xff]   ;;  %v1022_v38 = vld [vmem:[#allocation10 + $0x64] ss:$12 sps:$4 sm:$0xff]  }
  0x33   :  { %268 = vmatprep.subr.bf16.mxu0 %v986_v8  ;;  %904 = vmatprep.subr.bf16.mxu1 %v1141_v0  ;;  %v1034_v37 = vld [vmem:[#allocation10 + $0x20] ss:$12 sps:$4 sm:$0xff]   ;;  %v1035_v40 = vld [vmem:[#allocation10 + $0x38] ss:$12 sps:$4 sm:$0xff]   ;;  %v1026_v41 = vld [vmem:[#allocation10 + $0x7c] ss:$12 sps:$4 sm:$0xff]  }
  0x34   :  { %v1020_v39 = vld [vmem:[#allocation10 + $0x60] ss:$12 sps:$4 sm:$0xff]   ;;  %v1024_v42 = vld [vmem:[#allocation10 + $0x78] ss:$12 sps:$4 sm:$0xff]   ;;  %v1036_v43 = vld [vmem:[#allocation10 + $0x50] ss:$12 sps:$4 sm:$0xff]  }
  0x35   :  { %v1029_v44 = vld [vmem:[#allocation10 + $0x94] ss:$12 sps:$4 sm:$0xff]   ;;  %v1027_v45 = vld [vmem:[#allocation10 + $0x90] ss:$12 sps:$4 sm:$0xff]   ;;  %v1033_v47 = vld [vmem:[#allocation10 + $0xac] ss:$12 sps:$4 sm:$0xff]  }
  0x36   :  { %269 = vmatpush1.bf16.msra.mxu0 %v988_v10  ;;  %905 = vmatpush3.bf16.msra.mxu1 %v1007_v17  ;;  %v1037_v46 = vld [vmem:[#allocation10 + $0x68] ss:$12 sps:$4 sm:$0xff]   ;;  %v1259_v49 = vld [vmem:[%s1341_s2] sm:$0x1]  ;;  %v1038_v50 = vld [vmem:[#allocation10 + $0x80] ss:$12 sps:$4 sm:$0xff]  }
  0x37   :  { %270 = vmatprep.subr.bf16.mxu0 %v989_v11  ;;  %906 = vmatprep.subr.bf16.mxu1 %v1141_v0  ;;  %v1031_v48 = vld [vmem:[#allocation10 + $0xa8] ss:$12 sps:$4 sm:$0xff]   ;;  %v84_v51 = vpack.c.bf16 %v1259_v49, %v1259_v49  ;;  %v1039_v52 = vld [vmem:[#allocation10 + $0x98] ss:$12 sps:$4 sm:$0xff]   ;;  %v1040_v53 = vld [vmem:[#allocation10 + $0xb0] ss:$12 sps:$4 sm:$0xff]  }
  0x38   :  { %v1041_v54 = vld [vmem:[%s1346_s7] sm:$0xff]   ;;  %v1043_v56 = vld [vmem:[%s1346_s7 + $0x10] sm:$0xff]   ;;  %v1044_v57 = vld [vmem:[%s1346_s7 + $0x18] sm:$0xff]   ;;  %v248_v4 = vshrl.u32 %v247_v3, 7  ;;  %vm624_vm1 = vcmask 1040384   ;;  %vm630_vm4 = vcmask 0  }
  0x39   :  { %v1045_v58 = vld [vmem:[%s1346_s7 + $0x20] sm:$0xff]   ;;  %v1046_v59 = vld [vmem:[%s1346_s7 + $0x28] sm:$0xff]   ;;  %v1047_v60 = vld [vmem:[%s1346_s7 + $0x30] sm:$0xff]   ;;  %vm625_vm2 = vsmask.f32 256 }
  0x3a   :  { %271 = vmatpush1.bf16.msra.mxu0 %v991_v13  ;;  %907 = vmatpush3.bf16.msra.mxu1 %v1011_v20  ;;  %v1048_v61 = vld [vmem:[%s1346_s7 + $0x38] sm:$0xff]   ;;  %v1300_v5 = vsub.s32 0, %v248_v4  ;;  %v375_v6 = vld [vmem:[%s1345_s6] sm:$0x7]  ;;  %v253_v8 = vsub.s32 1, %v248_v4  ;;  %vm626_vm3 = vmand %vm624_vm1, %vm625_vm2 }
  0x3b   :  { %272 = vmatprep.subr.bf16.mxu0 %v992_v15  ;;  %908 = vmatprep.subr.bf16.mxu1 %v1141_v0  ;;  %v117_v7 = vld [vmem:[%s1344_s5] sm:$0x7]  ;;  %632 = vst.msk [vmem:[#allocation4] sm:$0x1] %vm630_vm4, %v1141_v0 }
  0x3c   :  { %v250_v9 = vrot.slane %v117_v7, %v1300_v5  ;;  %v508_v10 = vrot.slane %v375_v6, %v1300_v5  ;;  %v254_v11 = vrot.slane %v117_v7, %v253_v8  ;;  %v512_v12 = vrot.slane %v375_v6, %v253_v8 }
  0x3e   :  { %273 = vmatpush1.bf16.msra.mxu0 %v994_v16  ;;  %909 = vmatpush3.bf16.msra.mxu1 %v1015_v24  ;;  %v958_v13 = vadd.f32 %v508_v10, %v250_v9  ;;  %v960_v15 = vadd.f32 %v512_v12, %v254_v11 }
  0x3f   :  { %274 = vmatprep.subr.bf16.mxu0 %v995_v18  ;;  %910 = vmatprep.subr.bf16.mxu1 %v1141_v0 }
  0x42   :  { %275 = vmatpush1.bf16.msra.mxu0 %v998_v19  ;;  %911 = vmatpush3.bf16.msra.mxu1 %v1019_v28 }
  0x43   :  { %276 = vmatprep.subr.bf16.mxu0 %v999_v21  ;;  %912 = vmatprep.subr.bf16.mxu1 %v1141_v0 }
  0x46   :  { %277 = vmatpush1.bf16.msra.mxu0 %v1002_v22  ;;  %913 = vmatpush3.bf16.msra.mxu1 %v1023_v31 }
  0x47   :  { %520 = vmatprep.subr.bf16.mxu0 %v1006_v25  ;;  %918 = vmatprep.subr.bf16.mxu1 %v1141_v0 }
  0x49   :  { %295 = vmatmul.mubr.bf16.vlgmr.msra.gmra.mrb[0].mxu0 %v82_v26  ;;  %915 = vmatmul.mubr.bf16.vlgmr.msra.gmra.mrb[0].mxu1 %v82_v26 }
  0x4a   :  { %521 = vmatpush1.bf16.msra.mxu0 %v1004_v27  ;;  %552 = vmatprep.mubr.bf16.mxu0 %v1142_v1 }
  0x4b   :  { %522 = vmatprep.subr.bf16.mxu0 %v1010_v29  ;;  %919 = vmatpush3.bf16.msra.mxu1 %v1030_v35  ;;  %v257_v29 = vsub.s32 2, %v248_v4 }
  0x4c   :  { %920 = vmatprep.subr.bf16.mxu1 %v1141_v0  ;;  %934 = vmatprep.mubr.msk.bf16.mxu1 %vm1143_vm0, %v1141_v0 }
  0x4e   :  { %523 = vmatpush1.bf16.msra.mxu0 %v1008_v30  ;;  %v516_v30 = vrot.slane %v375_v6, %v257_v29  ;;  %v745_v6 = vld [vmem:[#allocation4] sm:$0x1] }
  0x4f   :  { %524 = vmatprep.subr.bf16.mxu0 %v1014_v32  ;;  %921 = vmatpush3.bf16.msra.mxu1 %v1034_v37  ;;  %v258_v32 = vrot.slane %v117_v7, %v257_v29 }
  0x50   :  { %922 = vmatprep.subr.bf16.mxu1 %v1141_v0 }
  0x52   :  { %525 = vmatpush1.bf16.msra.mxu0 %v1012_v33 }
  0x53   :  { %526 = vmatprep.subr.bf16.mxu0 %v1018_v34  ;;  %923 = vmatpush3.bf16.msra.mxu1 %v1035_v40 }
  0x54   :  { %924 = vmatprep.subr.bf16.mxu1 %v1141_v0 }
  0x56   :  { %527 = vmatpush1.bf16.msra.mxu0 %v1016_v36 }
  0x57   :  { %528 = vmatprep.subr.bf16.mxu0 %v1022_v38  ;;  %925 = vmatpush3.bf16.msra.mxu1 %v1036_v43 }
  0x58   :  { %926 = vmatprep.subr.bf16.mxu1 %v1141_v0 }
  0x5a   :  { %529 = vmatpush1.bf16.msra.mxu0 %v1020_v39 }
  0x5b   :  { %530 = vmatprep.subr.bf16.mxu0 %v1026_v41  ;;  %927 = vmatpush3.bf16.msra.mxu1 %v1037_v46 }
  0x5c   :  { %928 = vmatprep.subr.bf16.mxu1 %v1141_v0 }
  0x5e   :  { %531 = vmatpush1.bf16.msra.mxu0 %v1024_v42 }
  0x5f   :  { %532 = vmatprep.subr.bf16.mxu0 %v1029_v44  ;;  %929 = vmatpush3.bf16.msra.mxu1 %v1038_v50  ;;  %v1144_v50 = vmov -inf  }
  0x60   :  { %930 = vmatprep.subr.bf16.mxu1 %v1141_v0  ;;  %631 = vst.msk [vmem:[#allocation3] sm:$0x1] %vm630_vm4, %v1144_v50 }
  0x62   :  { %533 = vmatpush1.bf16.msra.mxu0 %v1027_v45  ;;  %v627_v45 = vld [vmem:[#allocation2] sm:$0x1] }
  0x63   :  { %534 = vmatprep.subr.bf16.mxu0 %v1033_v47  ;;  %931 = vmatpush3.bf16.msra.mxu1 %v1039_v52 }
  0x64   :  { %932 = vmatprep.subr.bf16.mxu1 %v1141_v0 }
  0x66   :  { %535 = vmatpush1.bf16.msra.mxu0 %v1031_v48 }
  0x67   :  { %938 = vmatprep.subr.bf16.mxu0 %v1141_v0  ;;  %933 = vmatpush3.bf16.msra.mxu1 %v1040_v53 }
  0x69   :  { %553 = vmatmul.mubr.bf16.vlgmr.msra.gmra.mrb[0].mxu0 %v84_v51 }
  0x6a   :  { %954 = vmatprep.mubr.msk.bf16.mxu0 %vm1143_vm0, %v1141_v0  ;;  %935 = vmatmul.mubr.bf16.vlgmr.msra.gmra.mrb[4].mxu1 %v84_v51 }
  0x6b   :  { %939 = vmatpush3.bf16.msra.mxu0 %v1041_v54 }
  0x6c   :  { %940 = vmatprep.subr.bf16.mxu0 %v1141_v0 }
  0x6f   :  { %941 = vmatpush3.bf16.msra.mxu0 %v1042_v55 }
  0x70   :  { %942 = vmatprep.subr.bf16.mxu0 %v1141_v0 }
  0x73   :  { %943 = vmatpush3.bf16.msra.mxu0 %v1043_v56 }
  0x74   :  { %944 = vmatprep.subr.bf16.mxu0 %v1141_v0 }
  0x77   :  { %945 = vmatpush3.bf16.msra.mxu0 %v1044_v57  ;;  %v739_v57 = vld [vmem:[#allocation3] sm:$0x1] }
  0x78   :  { %946 = vmatprep.subr.bf16.mxu0 %v1141_v0 }
  0x7b   :  { %947 = vmatpush3.bf16.msra.mxu0 %v1045_v58 }
  0x7c   :  { %948 = vmatprep.subr.bf16.mxu0 %v1141_v0 }
  0x7f   :  { %949 = vmatpush3.bf16.msra.mxu0 %v1046_v59 }
  0x80   :  { %950 = vmatprep.subr.bf16.mxu0 %v1141_v0 }
  0x83   :  { %951 = vmatpush3.bf16.msra.mxu0 %v1047_v60 }
  0x84   :  { %952 = vmatprep.subr.bf16.mxu0 %v1141_v0 }
  0x87   :  { %953 = vmatpush3.bf16.msra.mxu0 %v1048_v61 }
 0x11c   :  { %v337_v62 = vpop.f32.mrb[0].mxu1 }
 0x11d   :  { %v916_v63 = vpop.f32.mrb[1].mxu1  ;;  %v338_v36 = vadd.f32 %v337_v62, %v258_v32 }
 0x11e   :  { %v340_v1 = vpop.f32.mrb[2].mxu1 }
 0x11f   :  { %v917_v2 = vpop.f32.mrb[3].mxu1 }
 0x13c   :  { %v554_v14 = vpop.f32.mrb[0].mxu0 }
 0x13d   :  { %v959_v16 = vadd.f32 %v958_v13, %v554_v14  ;;  %v556_v17 = vpop.f32.mrb[1].mxu0  ;;  %v595_v23 = vpop.f32.mrb[4].mxu1 }
 0x13e   :  { %v558_v18 = vpop.f32.mrb[2].mxu0  ;;  %v961_v21 = vadd.f32 %v960_v15, %v556_v17  ;;  %v936_v24 = vpop.f32.mrb[5].mxu1  ;;  %v596_v34 = vadd.f32 %v595_v23, %v516_v30 }
 0x13f   :  { %v861_v19 = vmul.f32 -1.442695, %v959_v16  ;;  %v559_v20 = vpop.f32.mrb[3].mxu0  ;;  %v598_v25 = vpop.f32.mrb[6].mxu1 }
 0x140   :  { %v862_v22 = vmul.f32 -1.442695, %v961_v21  ;;  %v937_v26 = vpop.f32.mrb[7].mxu1 }
 0x141   :  { %1049 = vpow2.f32 %v861_v19 }
 0x142   :  { %1051 = vpow2.f32 %v862_v22 }
 0x14b   :  { %v1050_v27 = vpop.eup %1049 }
 0x14c   :  { %v605_v28 = vadd.f32 1.0, %v1050_v27  ;;  %v1052_v31 = vpop.eup %1051 }
 0x14d   :  { %v612_v33 = vadd.f32 1.0, %v1052_v31 }
 0x14e   :  { %1053 = vrcp.f32 %v605_v28 }
 0x14f   :  { %1055 = vrcp.f32 %v612_v33 }
 0x158   :  { %v1054_v35 = vpop.eup %1053 }
 0x159   :  { %v615_v37 = vmul.f32 %v1054_v35, %v596_v34  ;;  %v1056_v39 = vpop.eup %1055 }
 0x15a   :  { %v618_v40 = vsub.f32 1.0, %v1056_v39  ;;  %v620_v42 = vmul.f32 %v1056_v39, %v1259_v49  ;;  %v650_v49 = vld [vmem:[%s1347_s8] sm:$0x1]  ;;  %s1145_s8 = smov [#allocation12]  }
 0x15b   :  { %v616_v38 = vadd.f32 %v615_v37, %v338_v36 }
 0x15d   :  { %1057 = vtanh.f32 %v616_v38 }
 0x167   :  { %v1058_v41 = vpop.eup %1057 }
 0x168   :  { %v619_v43 = vmul.f32 %v1058_v41, %v618_v40 }
 0x16a   :  { %v621_v44 = vadd.f32 %v620_v42, %v619_v43 }
 0x16c   :  { %622 = vst [vmem:[%s1349_s10] sm:$0x1] %v621_v44  ;;  %v623_v46 = vpack.c.bf16 %v621_v44, %v621_v44  ;;  %s796_s10 = sshll.u32 %s1145_s8, 4  ;;  %s797_s10 = int_to_ptr.vmem [resolvable:$true] %s796_s10 }
 0x16d   :  { %s1109_s22 = scalar_lea.vmem %s797_s10, 16  ;;  %s1113_s23 = scalar_lea.vmem %s797_s10, 32 }
 0x16e   :  { %v628_v47 = vsel %vm626_vm3, %v623_v46, %v627_v45  ;;  %p1110_p3 = scmp.ne.s32.totalorder %s797_s10, %s1109_s22  ;;  %p1114_p4 = scmp.lt.s32.totalorder %s797_s10, %s797_s10 }
 0x16f   :  { %629 = vst [vmem:[#allocation2] sm:$0x1] %v628_v47  ;;  %p1115_p5 = scmp.lt.s32.totalorder %s1113_s23, %s1109_s22 }
 0x171   :  { %p1116_p6 = por %p1115_p5, %p1114_p4 }
 0x173   :  { %p1117_p7 = pnand %p1116_p6, %p1110_p3 }
 0x176   :  { %v633_v48 = vld [vmem:[#allocation2] sm:$0x1] }
 0x177   :  { %955 = vmatmul.mubr.bf16.vlgmr.msra.gmra.mrb[4].mxu0 %v633_v48 }
 0x24a   :  { %v733_v51 = vpop.f32.mrb[4].mxu0 }
 0x24b   :  { %v734_v52 = vadd.f32 %v733_v51, %v650_v49  ;;  %v956_v53 = vpop.f32.mrb[5].mxu0 }
 0x24c   :  { %v736_v54 = vpop.f32.mrb[6].mxu0 }
 0x24d   :  { %769 = vst [vmem:[#allocation12] sm:$0x1] %v734_v52  ;;  %v957_v55 = vpop.f32.mrb[7].mxu0  ;;  %v741_v56 = vsel %vm624_vm1, %v734_v52, -inf }
 0x24e   :  { %742 = vmax.xlane.f32.xlu0 %v741_v56 }
 0x254   :  { %v773_v17 = vld [vmem:[#allocation12] sm:$0x1] }
 0x2db   :  { %v743_v58 = vpop.xlane.xlu0 %742 }
 0x2dc   :  { %v744_v59 = vmax.f32 %v739_v57, %v743_v58 }
 0x2de   :  { %v746_v60 = vsub.f32 %v739_v57, %v744_v59  ;;  %768 = vst.msk [vmem:[#allocation3] sm:$0x1] %vm630_vm4, %v744_v59  ;;  %752 = vperm.xlu0 %975, %v744_v59  }
 0x2e0   :  { %v747_v3 = vmul.f32 1.442695, %v746_v60 }
 0x2e5   :  { %v774_v13 = vld [vmem:[#allocation3] sm:$0x1] }
 0x35d   :  { %v753_v0 = vpop.permute.xlu0 %752 }
 0x35e   :  { %v758_v61 = vrot.slane %v753_v0, %v1300_v5 }
 0x360   :  { %v759_v62 = vsub.f32 %v734_v52, %v758_v61 }
 0x362   :  { %v760_v63 = vmul.f32 1.442695, %v759_v62 }
 0x364   :  { %1059 = vpow2.f32 %v760_v63 }
 0x365   :  { %1061 = vpow2.f32 %v747_v3 }
 0x36e   :  { %v1060_v1 = vpop.eup %1059 }
 0x36f   :  { %v762_v2 = vsel %vm624_vm1, %v1060_v1, 0.0  ;;  %v1062_v4 = vpop.eup %1061 }
 0x370   :  { %763 = vadd.xlane.f32.xlu1 %v762_v2  ;;  %v749_v7 = vmul.f32 %v1062_v4, %v745_v6 }
 0x3fd   :  { %v764_v8 = vpop.xlane.xlu1 %763 }
 0x3fe   :  { %v765_v9 = vadd.f32 %v764_v8, %v749_v7 }
 0x400   :  { %767 = vst.msk [vmem:[#allocation4] sm:$0x1] %vm630_vm4, %v765_v9 }
 0x407   :  { %v775_v10 = vld [vmem:[#allocation4] sm:$0x1] }
 0x408   :  { %1063 = vlog2.f32 %v775_v10 }
 0x412   :  { %v1064_v11 = vpop.eup %1063 }
 0x413   :  { %v777_v12 = vmul.f32 0.6931472, %v1064_v11 }
 0x415   :  { %v778_v14 = vadd.f32 %v777_v12, %v774_v13 }
 0x417   :  { %781 = vperm.xlu1 %976, %v778_v14  }
 0x496   :  { %v782_v15 = vpop.permute.xlu1 %781 }
 0x497   :  { %v787_v16 = vrot.slane %v782_v15, %v1300_v5 }
 0x499   :  { %v788_v18 = vsub.f32 %v773_v17, %v787_v16 }
 0x49b   :  { %789 = vst [vmem:[#allocation12] sm:$0x1] %v788_v18 }
 0x49c   :  { %1120 = shalt.err (!%p1117_p7)
}
 0x49d   :  { %s1121_s2 = scalar_lea.hbm %s1348_s9, 16 }
 0x49e   :  { %p1122_p8 = scmp.ne.s32.totalorder %s1348_s9, %s1121_s2  ;;  %p1125_p9 = scmp.lt.u32.totalorder %s1121_s2, %s1348_s9 }
 0x4a0   :  { %p1127_p10 = pnand %p1125_p9, %p1122_p8 }
 0x4a2   :  { %1130 = shalt.err (!%p1127_p10)
}
 0x4a3   :  { %799 = dma.vmem_to_hbm [thread:$0]  %s797_s10, 16, %s1348_s9, [#allocation9]  }
 0x4a4   :  { %1135 = dma.done.wait [#allocation9], 16  }
 0x4a5   :  { %1136 = vsyncadd [#allocation9], 4294967280 }
 0x4a6   :  { %807 = vsyncpa [#allocation8], 1 }
 0x4a7   :  { %808 = vsyncpa [#allocation11], 1 }
 0x4a8   :  { %809 = vsyncpa [#allocation9], 1 }

</bundles_post_ra>
